<compile_context>
chip_gen: v5e
topology: v5e:2x2
jax: 0.10.0
libtpu: 0.0.40
codegen_flags: <defaults>
</compile_context>

<pallas_src>
from typing import NamedTuple, Optional, Union

import jax
import jax.numpy as jnp
from jax.experimental import pallas as pl
from jax.experimental.pallas import tpu as pltpu


def _round_up(x: int, m: int) -> int:
    return ((x + m - 1) // m) * m


class ROLANNWeights(NamedTuple):
    """Pre-transformed ROLANN weights (compute once, reuse across forwards)."""
    wt: jax.Array      # (d_pad, c_pad) bf16 : W[:, 1:].T, zero-padded
    b: jax.Array       # (1, c_pad)    f32  : ones-coefficient (bias), padded
    c: int
    d: int
    c_pad: int
    d_pad: int
    tile_c: int
    tile_k: int


def _derive_cd_tiles(c: int, d: int, tile_c: Optional[int], tile_k: Optional[int]):
    # Class tile: lane-dense multiple of 128; 256 fills the v6e/v7x MXU N dim.
    if tile_c is None:
        tile_c = 128 if c <= 128 else 256
    tile_c = max(128, _round_up(tile_c, 128))
    c_pad = _round_up(c, tile_c)
    # K tile: D padded to a multiple of 128; split into roughly equal 128-aligned
    # chunks no larger than the requested tile_k (default 512).
    d_pad0 = _round_up(max(d, 1), 128)
    tile_k = 512 if tile_k is None else max(128, _round_up(tile_k, 128))
    k_steps = -(-d_pad0 // tile_k)
    tile_k = _round_up(-(-d_pad0 // k_steps), 128)
    d_pad = k_steps * tile_k
    return tile_c, tile_k, c_pad, d_pad


def prepare_rolann_weights(w: jax.Array, *, tile_c: Optional[int] = None,
                           tile_k: Optional[int] = None) -> ROLANNWeights:
    """Transpose / cast / pad the stacked per-class weights (C, D+1) once."""
    c, dp1 = w.shape
    d = dp1 - 1
    tile_c, tile_k, c_pad, d_pad = _derive_cd_tiles(c, d, tile_c, tile_k)
    wt = jnp.transpose(w[:, 1:]).astype(jnp.bfloat16)          # (D, C)
    b = w[:, :1].T.astype(jnp.float32)                         # (1, C)
    if (d_pad, c_pad) != (d, c):
        wt = jnp.pad(wt, ((0, d_pad - d), (0, c_pad - c)))
    if c_pad != c:
        b = jnp.pad(b, ((0, 0), (0, c_pad - c)))
    return ROLANNWeights(wt, b, c, d, c_pad, d_pad, tile_c, tile_k)


def _rolann_fwd_kernel(x_ref, wt_ref, b_ref, o_ref, acc_ref):
    k = pl.program_id(2)

    @pl.when(k == 0)
    def _():
        acc_ref[...] = jnp.zeros_like(acc_ref)

    # X tile is loaded in its HBM dtype and cast to bf16 here (no extra HBM
    # pass); f32 accumulation on the MXU.
    acc_ref[...] += jnp.dot(x_ref[...].astype(jnp.bfloat16), wt_ref[...],
                            preferred_element_type=jnp.float32)

    @pl.when(k == pl.num_programs(2) - 1)
    def _():
        logits = acc_ref[...] + b_ref[...]               # (tile_n, tile_c) f32
        # sigmoid(z) = 0.5 * (tanh(z/2) + 1): single EUP op per element.
        o_ref[...] = (0.5 * (jnp.tanh(0.5 * logits) + 1.0)).astype(o_ref.dtype)


def rolann_forward(x: jax.Array,
                   w: Union[jax.Array, ROLANNWeights],
                   *,
                   tile_n: int = 512,
                   tile_c: Optional[int] = None,
                   tile_k: Optional[int] = None,
                   out_dtype=jnp.float32) -> jax.Array:
    """x: (n, D);  w: (C, D+1) stacked per-class ROLANN weights (ones term
    first) or a precomputed ROLANNWeights.  Returns y_hat of shape (n, C)."""
    if not isinstance(w, ROLANNWeights):
        w = prepare_rolann_weights(w, tile_c=tile_c, tile_k=tile_k)

    n, d = x.shape
    assert d == w.d, "feature dim of x must match the prepared weights"
    tile_c, tile_k, c_pad, d_pad = w.tile_c, w.tile_k, w.c_pad, w.d_pad

    # Row tile: multiple of 16 (bf16 sublane packing), clamped to the padded n.
    tile_n = max(16, min(_round_up(tile_n, 16), _round_up(n, 16)))
    n_pad = _round_up(n, tile_n)

    if (n_pad, d_pad) != (n, d):
        x = jnp.pad(x, ((0, n_pad - n), (0, d_pad - d)))

    grid = (n_pad // tile_n, c_pad // tile_c, d_pad // tile_k)
    n_tiles, c_tiles = grid[0], grid[1]
    x_bytes = jnp.dtype(x.dtype).itemsize
    out_bytes = jnp.dtype(out_dtype).itemsize

    cost = pl.CostEstimate(
        flops=2 * n_pad * d_pad * c_pad,
        transcendentals=n_pad * c_pad,
        bytes_accessed=(n_pad * d_pad * x_bytes * c_tiles     # X re-read per class tile
                        + d_pad * c_pad * 2 * n_tiles         # W re-read per row tile
                        + c_pad * 4 * n_tiles                 # bias re-read per row tile
                        + n_pad * c_pad * out_bytes),         # output written once
    )

    # Explicit VMEM budget with headroom (double-buffered tiles + accumulator);
    # safe on v5e (16 MiB scoped default) and v7x (64 MiB physical).
    est_vmem = (2 * (tile_n * tile_k * x_bytes
                     + tile_k * tile_c * 2
                     + tile_c * 4
                     + tile_n * tile_c * out_bytes)
                + tile_n * tile_c * 4)
    vmem_limit = int(min(48 << 20, max(16 << 20, 2 * est_vmem)))

    y = pl.pallas_call(
        _rolann_fwd_kernel,
        out_shape=jax.ShapeDtypeStruct((n_pad, c_pad), out_dtype),
        grid_spec=pltpu.PrefetchScalarGridSpec(
            num_scalar_prefetch=0,
            grid=grid,
            in_specs=[
                pl.BlockSpec((tile_n, tile_k), lambda i, j, k: (i, k)),  # X tile
                pl.BlockSpec((tile_k, tile_c), lambda i, j, k: (k, j)),  # W[:,1:].T tile
                pl.BlockSpec((1, tile_c), lambda i, j, k: (0, j)),       # bias tile
            ],
            out_specs=pl.BlockSpec((tile_n, tile_c), lambda i, j, k: (i, j)),
            scratch_shapes=[pltpu.VMEM((tile_n, tile_c), jnp.float32)],
        ),
        compiler_params=pltpu.CompilerParams(
            dimension_semantics=("parallel", "parallel", "arbitrary"),
            vmem_limit_bytes=vmem_limit,
        ),
        cost_estimate=cost,
    )(x, w.wt, w.b)

    # Drop padded rows and the padded (sigmoid(0)=0.5) classes.
    return y[:n, :w.c]


def _reference(x, w):
    """Pure-JAX f32 reference of the exact PyTorch forward semantics."""
    n = x.shape[0]
    xp = jnp.concatenate([jnp.ones((n, 1), jnp.float32), x.astype(jnp.float32)], axis=1)
    return jax.nn.sigmoid(xp @ w.astype(jnp.float32).T)


if __name__ == "__main__":
    key = jax.random.PRNGKey(0)
    kx, kw, kx2, kw2 = jax.random.split(key, 4)

    # Case 1: small shapes consistent with the forward (n samples, D features, C classes).
    n, d_feat, num_classes = 16, 32, 4
    x = jax.random.normal(kx, (n, d_feat), dtype=jnp.float32)
    w = 0.1 * jax.random.normal(kw, (num_classes, d_feat + 1), dtype=jnp.float32)

    y = rolann_forward(x, w)
    jax.block_until_ready(y)
    y_ref = _reference(x, w)
    assert y.shape == (n, num_classes)
    assert y.dtype == jnp.float32
    assert jnp.allclose(y, y_ref, atol=2e-2, rtol=2e-2), "mismatch vs reference (small)"

    # Case 2: non-divisible n and D -> exercises row/class/K tiling, padding,
    # the accumulator path, and the precomputed-weights fast path.
    n2, d2, c2 = 300, 300, 6
    x2 = jax.random.normal(kx2, (n2, d2), dtype=jnp.float32)
    w2 = 0.1 * jax.random.normal(kw2, (c2, d2 + 1), dtype=jnp.float32)
    prepped = prepare_rolann_weights(w2, tile_k=128)       # hoisted weight transform
    y2 = rolann_forward(x2, prepped, tile_n=128)
    jax.block_until_ready(y2)
    y2_ref = _reference(x2, w2)
    assert y2.shape == (n2, c2)
    assert jnp.allclose(y2, y2_ref, atol=2e-2, rtol=2e-2), "mismatch vs reference (tiled)"

    # Case 3: bf16 output knob (halves output writeback traffic).
    y3 = rolann_forward(x2, prepped, tile_n=128, out_dtype=jnp.bfloat16)
    jax.block_until_ready(y3)
    assert y3.dtype == jnp.bfloat16
    assert jnp.allclose(y3.astype(jnp.float32), y2_ref, atol=3e-2, rtol=3e-2), \
        "mismatch vs reference (bf16 out)"

    print("KERNEL_OK")
</pallas_src>

<mosaic_0001>
module attributes {stable_mosaic.version = 11 : i64} {
  func.func @_rolann_fwd_kernel(%arg0: i32, %arg1: i32, %arg2: i32, %arg3: memref<16x128xf32, #tpu.memory_space<vmem>>, %arg4: memref<128x128xbf16, #tpu.memory_space<vmem>>, %arg5: memref<1x128xf32, #tpu.memory_space<vmem>>, %arg6: memref<16x128xf32, #tpu.memory_space<vmem>>, %arg7: memref<16x128xf32, #tpu.memory_space<vmem>>) attributes {dimension_semantics = [#tpu.dimension_semantics<parallel>, #tpu.dimension_semantics<parallel>, #tpu.dimension_semantics<arbitrary>], iteration_bounds = array<i64: 1, 1, 1>, scalar_prefetch = 0 : i64, scratch_operands = 1 : i64, tpu.core_type = #tpu.core_type<tc>, window_params = [{transform_indices = @transform_0, window_bounds = array<i64: 16, 128>}, {transform_indices = @transform_1, window_bounds = array<i64: 128, 128>}, {transform_indices = @transform_2, window_bounds = array<i64: 1, 128>}, {transform_indices = @transform_3, window_bounds = array<i64: 16, 128>}]} {
    %c0_i32 = arith.constant 0 : i32
    %0 = arith.cmpi eq, %arg2, %c0_i32 : i32
    %1 = arith.extui %0 : i1 to i32
    %c0_i32_0 = arith.constant 0 : i32
    %2 = arith.cmpi ne, %1, %c0_i32_0 : i32
    scf.if %2 {
      %cst_10 = arith.constant 0.000000e+00 : f32
      %13 = vector.broadcast %cst_10 : f32 to vector<16x128xf32>
      %c0_11 = arith.constant 0 : index
      %c0_12 = arith.constant 0 : index
      %14 = vector.load %arg7[%c0_11, %c0_12] : memref<16x128xf32, #tpu.memory_space<vmem>>, vector<16x128xf32>
      tpu.vector_store %arg7[%c0_11, %c0_12], %13 {strides = array<i32>} : memref<16x128xf32, #tpu.memory_space<vmem>>, vector<16x128xf32>,
    } else {
    }
    %c0 = arith.constant 0 : index
    %c0_1 = arith.constant 0 : index
    %3 = vector.load %arg7[%c0, %c0_1] : memref<16x128xf32, #tpu.memory_space<vmem>>, vector<16x128xf32>
    %c0_2 = arith.constant 0 : index
    %c0_3 = arith.constant 0 : index
    %4 = vector.load %arg3[%c0_2, %c0_3] : memref<16x128xf32, #tpu.memory_space<vmem>>, vector<16x128xf32>
    %5 = arith.truncf %4 : vector<16x128xf32> to vector<16x128xbf16>
    %c0_4 = arith.constant 0 : index
    %c0_5 = arith.constant 0 : index
    %6 = vector.load %arg4[%c0_4, %c0_5] : memref<128x128xbf16, #tpu.memory_space<vmem>>, vector<128x128xbf16>
    %cst = arith.constant dense<0.000000e+00> : vector<16x128xf32>
    %7 = tpu.matmul %5, %6, %cst {dimension_numbers = #tpu.dot_dimension_numbers<[1], [0], [0], [1], [0, 0, 1, 1], [], []>} : vector<16x128xbf16>, vector<128x128xbf16>, vector<16x128xf32> -> vector<16x128xf32>
    %8 = arith.addf %3, %7 : vector<16x128xf32>
    %c0_6 = arith.constant 0 : index
    %c0_7 = arith.constant 0 : index
    %9 = vector.load %arg7[%c0_6, %c0_7] : memref<16x128xf32, #tpu.memory_space<vmem>>, vector<16x128xf32>
    tpu.vector_store %arg7[%c0_6, %c0_7], %8 {strides = array<i32>} : memref<16x128xf32, #tpu.memory_space<vmem>>, vector<16x128xf32>,
    %c0_i32_8 = arith.constant 0 : i32
    %10 = arith.cmpi eq, %arg2, %c0_i32_8 : i32
    %11 = arith.extui %10 : i1 to i32
    %c0_i32_9 = arith.constant 0 : i32
    %12 = arith.cmpi ne, %11, %c0_i32_9 : i32
    scf.if %12 {
      %c0_10 = arith.constant 0 : index
      %c0_11 = arith.constant 0 : index
      %13 = vector.load %arg7[%c0_10, %c0_11] : memref<16x128xf32, #tpu.memory_space<vmem>>, vector<16x128xf32>
      %c0_12 = arith.constant 0 : index
      %c0_13 = arith.constant 0 : index
      %14 = vector.load %arg5[%c0_12, %c0_13] : memref<1x128xf32, #tpu.memory_space<vmem>>, vector<1x128xf32>
      %15 = vector.broadcast %14 : vector<1x128xf32> to vector<16x128xf32>
      %16 = arith.addf %13, %15 : vector<16x128xf32>
      %cst_14 = arith.constant 5.000000e-01 : f32
      %17 = vector.broadcast %cst_14 : f32 to vector<16x128xf32>
      %18 = arith.mulf %17, %16 : vector<16x128xf32>
      %19 = math.tanh %18 : vector<16x128xf32>
      %cst_15 = arith.constant 1.000000e+00 : f32
      %20 = vector.broadcast %cst_15 : f32 to vector<16x128xf32>
      %21 = arith.addf %19, %20 : vector<16x128xf32>
      %cst_16 = arith.constant 5.000000e-01 : f32
      %22 = vector.broadcast %cst_16 : f32 to vector<16x128xf32>
      %23 = arith.mulf %22, %21 : vector<16x128xf32>
      %c0_17 = arith.constant 0 : index
      %c0_18 = arith.constant 0 : index
      %24 = vector.load %arg6[%c0_17, %c0_18] : memref<16x128xf32, #tpu.memory_space<vmem>>, vector<16x128xf32>
      tpu.vector_store %arg6[%c0_17, %c0_18], %23 {strides = array<i32>} : memref<16x128xf32, #tpu.memory_space<vmem>>, vector<16x128xf32>,
    } else {
    }
    return
  }
  func.func @transform_0(%arg0: i32, %arg1: i32, %arg2: i32) -> (i32, i32) {
    %c0_i32 = arith.constant 0 : i32
    return %arg0, %arg2 : i32, i32
  }
  func.func @transform_1(%arg0: i32, %arg1: i32, %arg2: i32) -> (i32, i32) {
    %c0_i32 = arith.constant 0 : i32
    return %arg2, %arg1 : i32, i32
  }
  func.func @transform_2(%arg0: i32, %arg1: i32, %arg2: i32) -> (i32, i32) {
    %c0_i32 = arith.constant 0 : i32
    %c0_i32_0 = arith.constant 0 : i32
    return %c0_i32, %arg1 : i32, i32
  }
  func.func @transform_3(%arg0: i32, %arg1: i32, %arg2: i32) -> (i32, i32) {
    %c0_i32 = arith.constant 0 : i32
    return %arg0, %arg1 : i32, i32
  }
}

</mosaic_0001>

<bundles_post_ra>
// kernel: tpu_custom_call.1
= control target key start
LH: loop header
LB: loop body
LE: loop exit
PB: predicated region body
PF: predicated region fallthrough
CT: control target
= control target key end

     0   :  { %8 = vsyncpa [#allocation4], 0  ;;  %s356_s0 = inlined_call_operand.hbm [shape: f32[16,128], index: 0, kind: input, shape index: {}]   ;;  %s357_s1 = inlined_call_operand.hbm [shape: bf16[128,128], index: 1, kind: input, shape index: {}]   ;;  %s358_s2 = inlined_call_operand.vmem [shape: f32[1,128], index: 2, kind: input, shape index: {}]   ;;  %s359_s3 = inlined_call_operand.hbm [shape: f32[16,128], index: 3, kind: output, shape index: {}]  }
   0x1   :  { %9 = vsyncpa [#allocation7], 0 }
   0x2   :  { %10 = vsyncpa [#allocation5], 0  ;;  %s15_s14 = sshll.u32 %s356_s0, 4  ;;  %s311_s15 = smov [#allocation3]   ;;  %s16_s14 = int_to_ptr.hbm [resolvable:$true] %s15_s14 }
   0x3   :  { %s17_s16 = sshll.u32 %s311_s15, 4  ;;  %s28_s19 = sshll.u32 %s357_s1, 4  ;;  %s18_s16 = int_to_ptr.vmem [resolvable:$true] %s17_s16  ;;  %s29_s19 = int_to_ptr.hbm [resolvable:$true] %s28_s19 }
   0x4   :  { %s312_s20 = smov 128   ;;  %s313_s21 = smov 8  }
   0x5   :  { %23 = dma.hbm_to_vmem [thread:$0]  %s16_s14, 256, %s18_s16, [#allocation4], %s312_s20, %s312_s20, %s313_s21  }
   0x6   :  { %s314_s22 = smov [#allocation6]   ;;  %s315_s24 = smov 64  }
   0x7   :  { %s30_s23 = sshll.u32 %s314_s22, 4  ;;  %s316_s0 = smov 4   ;;  %s31_s23 = int_to_ptr.vmem [resolvable:$true] %s30_s23 }
   0x8   :  { %36 = dma.hbm_to_vmem [thread:$0]  %s29_s19, 1024, %s31_s23, [#allocation7], %s315_s24, %s315_s24, %s316_s0  }
   0x9   :  { %305 = dma.done.wait [#allocation4], 256  }
   0xa   :  { %306 = vsyncadd [#allocation4], 4294967040 }
   0xb   :  { %307 = dma.done.wait [#allocation7], 1024  }
   0xc   :  { %308 = vsyncadd [#allocation7], 4294966272  ;;  %v220_v0 = vld [vmem:[#allocation6 + $0x38] sm:$0xff]  ;;  %v219_v1 = vld [vmem:[#allocation6 + $0x30] sm:$0xff]  ;;  %s317_s26 = smov [#allocation8]   ;;  %s167_s30 = sshll.u32 %s359_s3, 4  ;;  %s168_s30 = int_to_ptr.hbm [resolvable:$true] %s167_s30 }
   0xd   :  { %122 = vmatpush.bf16.msra.mxu0 %v220_v0  ;;  %v218_v2 = vld [vmem:[#allocation6 + $0x28] sm:$0xff]  ;;  %v217_v3 = vld [vmem:[#allocation6 + $0x20] sm:$0xff]  ;;  %v216_v4 = vld [vmem:[#allocation6 + $0x18] sm:$0xff]  ;;  %s165_s27 = sshll.u32 %s317_s26, 4  ;;  %s166_s27 = int_to_ptr.vmem [resolvable:$true] %s165_s27 }
   0xe   :  { %v215_v5 = vld [vmem:[#allocation6 + $0x10] sm:$0xff]  ;;  %v214_v6 = vld [vmem:[#allocation6 + $0x8] sm:$0xff]  ;;  %v213_v7 = vld [vmem:[#allocation6] sm:$0xff] }
   0xf   :  { %v55_v8 = vld [vmem:[#allocation3] sm:$0xff]  ;;  %v56_v9 = vld [vmem:[#allocation3 + $0x8] sm:$0xff] }
  0x10   :  { %v57_v10 = vpack.c.bf16 %v56_v9, %v55_v8  ;;  %v228_v11 = vld [vmem:[%s358_s2] ss:$0 sm:$0xff] }
  0x11   :  { %123 = vmatpush.bf16.msra.mxu0 %v219_v1 }
  0x15   :  { %124 = vmatpush.bf16.msra.mxu0 %v218_v2 }
  0x19   :  { %125 = vmatpush.bf16.msra.mxu0 %v217_v3 }
  0x1d   :  { %126 = vmatpush.bf16.msra.mxu0 %v216_v4 }
  0x21   :  { %127 = vmatpush.bf16.msra.mxu0 %v215_v5 }
  0x25   :  { %128 = vmatpush.bf16.msra.mxu0 %v214_v6 }
  0x29   :  { %129 = vmatpush.bf16.msra.mxu0 %v213_v7 }
  0x2c   :  { %130 = vmatmul.bf16.vlgmr.msra.gmra.mxu0 %v57_v10 }
  0xa9   :  { %v131_v12 = vpop.f32.mrf.mxu0 }
  0xaa   :  { %v149_v13 = vadd.f32 %v228_v11, %v131_v12 }
  0xac   :  { %v151_v14 = vmul.f32 0.5, %v149_v13 }
  0xae   :  { %229 = vtanh.f32 %v151_v14 }
  0xb1   :  { %v133_v15 = vpop.f32.mrf.mxu0 }
  0xb2   :  { %v150_v16 = vadd.f32 %v228_v11, %v133_v15 }
  0xb4   :  { %v230_v17 = vpop.eup %229  ;;  %v152_v18 = vmul.f32 0.5, %v150_v16 }
  0xb5   :  { %v155_v19 = vadd.f32 1.0, %v230_v17 }
  0xb6   :  { %231 = vtanh.f32 %v152_v18 }
  0xb7   :  { %v157_v20 = vmul.f32 0.5, %v155_v19 }
  0xb9   :  { %159 = vst [vmem:[#allocation8] sm:$0xff] %v157_v20 }
  0xbc   :  { %v232_v21 = vpop.eup %231 }
  0xbd   :  { %v156_v22 = vadd.f32 1.0, %v232_v21 }
  0xbf   :  { %v158_v23 = vmul.f32 0.5, %v156_v22 }
  0xc1   :  { %160 = vst [vmem:[#allocation8 + $0x8] sm:$0xff] %v158_v23 }
  0xc2   :  { %173 = dma.vmem_to_hbm [thread:$0]  %s166_s27, 256, %s168_s30, [#allocation5], %s312_s20, %s312_s20, %s313_s21  }
  0xc3   :  { %309 = dma.done.wait [#allocation5], 256  }
  0xc4   :  { %310 = vsyncadd [#allocation5], 4294967040 }
  0xc5   :  { %178 = vsyncpa [#allocation4], 1 }
  0xc6   :  { %179 = vsyncpa [#allocation7], 1 }
  0xc7   :  { %180 = vsyncpa [#allocation5], 1 }

</bundles_post_ra>
